<compile_context>
chip_gen: v6e
topology: v6e:2x2x1
jax: 0.10.0
libtpu: 0.0.40
codegen_flags: <defaults>
</compile_context>

<pallas_src>
import jax
import jax.numpy as jnp
from jax.experimental import pallas as pl
from jax.experimental.pallas import tpu as pltpu


def _round_up(x, m):
    return ((x + m - 1) // m) * m


def _linear_kernel(x_ref, w_ref, b_ref, o_ref, acc_ref):
    """One (row-tile, k-tile) step of y = X @ W_block + b.

    x_ref: (TILE_R, TILE_K) VMEM    w_ref: (TILE_K, g) VMEM
    b_ref: (1,)             SMEM    o_ref: (TILE_R, g) VMEM
    acc_ref: (TILE_R, g) f32 VMEM scratch
    """
    k = pl.program_id(1)

    @pl.when(k == 0)
    def _():
        acc_ref[...] = jnp.zeros_like(acc_ref)

    # Natural MXU orientation: the big X tile is the LHS, contraction over its
    # lane (last) dim -> no hidden XLU transpose of the streamed tile.
    acc_ref[...] += jnp.dot(
        x_ref[...], w_ref[...], preferred_element_type=jnp.float32
    )

    @pl.when(k == pl.num_programs(1) - 1)
    def _():
        o_ref[...] = (acc_ref[...] + b_ref[0]).astype(o_ref.dtype)


def _choose_tiling(n_rows, f_eff, itemsize, target_tile_bytes):
    """Pick (tile_r, num_r, tile_k, num_k) so one X tile is ~target_tile_bytes."""
    bytes_per_row = f_eff * itemsize
    min_rows = 256  # minimum row granularity we want per step for K-tiling

    # Feature-axis (K) tiling: only when even a modest row tile at full F would
    # blow the budget, and only with K tiles that are multiples of 128 dividing
    # f_eff exactly (so no out-of-bounds K reads pollute the accumulation).
    tile_k, num_k = f_eff, 1
    if bytes_per_row * min_rows > target_tile_bytes and f_eff % 128 == 0:
        m = f_eff // 128
        for d in range(m, 0, -1):
            if m % d == 0 and 128 * d * itemsize * min_rows <= target_tile_bytes:
                tile_k = 128 * d
                num_k = f_eff // tile_k
                break
    # TODO(synk): for huge F that is not a multiple of 128 (or with no fitting
    # divisor) we fall back to full-F blocks with a small row tile, which can
    # still exceed the VMEM budget for extreme F.

    rows_fit = max(8, (target_tile_bytes // (tile_k * itemsize)) // 8 * 8)
    total_bytes = n_rows * bytes_per_row
    if n_rows <= rows_fit:
        if total_bytes >= 2 * 1024 * 1024 and n_rows >= 16:
            # Keep >=2 row tiles so v7x's two TensorCores both get work.
            tile_r = _round_up(pl.cdiv(n_rows, 2), 8)
        else:
            tile_r = n_rows  # single full block: no padding at all
    else:
        tile_r = rows_fit
    num_r = pl.cdiv(n_rows, tile_r)
    return tile_r, num_r, tile_k, num_k


def model_ann_forward(x, weight, bias, *, target_tile_bytes=8 * 1024 * 1024):
    """Pallas equivalent of ModelANN.forward.

    Args:
      x:      (N, F) float array (streamed in its native floating dtype)
      weight: (1, F) or (F,) float32   (PyTorch nn.Linear(features, 1) weight)
      bias:   (1,)   float32
      target_tile_bytes: per-buffer X tile size (default ~8 MiB; double-buffered
        ~16 MiB, safely under the 32 MiB scoped-VMEM budget on v5e/v6e/v7x).
    Returns:
      (N,) float32
    """
    n, f = x.shape
    if not jnp.issubdtype(x.dtype, jnp.floating):
        x = x.astype(jnp.float32)
    itemsize = jnp.dtype(x.dtype).itemsize

    w = weight.reshape(-1).astype(jnp.float32)  # (F,)
    b = bias.reshape(1).astype(jnp.float32)     # (1,)

    # ---- Lane folding for narrow features (F < 128): pack g rows per folded
    # row so the contraction (lane) dim is exactly 128.  The reshape of a
    # row-major (N, F) array is metadata-only (no HBM copy).
    g = 1
    if f < 128 and 128 % f == 0 and n % (128 // f) == 0:
        g = 128 // f
    n_rows = n // g
    f_eff = g * f
    x_k = x.reshape(n_rows, f_eff)

    # Block-diagonal replicated weight (f_eff, g): column j holds w in rows
    # j*f:(j+1)*f, so (x_folded @ w_block)[r, j] == dot(x[g*r + j], w).
    if g == 1:
        w_block = w.reshape(f, 1)
    else:
        eye = jnp.eye(g, dtype=jnp.float32)
        w_block = (eye[:, None, :] * w[None, :, None]).reshape(f_eff, g)
    w_block = w_block.astype(x.dtype)  # stream/dot in X's dtype; f32 accumulate

    tile_r, num_r, tile_k, num_k = _choose_tiling(
        n_rows, f_eff, itemsize, target_tile_bytes
    )
    n_rows_pad = tile_r * num_r

    out = pl.pallas_call(
        _linear_kernel,
        out_shape=jax.ShapeDtypeStruct((n_rows_pad, g), jnp.float32),
        grid_spec=pltpu.PrefetchScalarGridSpec(
            num_scalar_prefetch=0,
            grid=(num_r, num_k),
            in_specs=[
                # Row x K tiles of (folded) X stream through VMEM (auto
                # double-buffered DMA).
                pl.BlockSpec((tile_r, tile_k), lambda i, k: (i, k)),
                # Weight block: tiny; tiled only along K.
                pl.BlockSpec((tile_k, g), lambda i, k: (k, 0)),
                # Bias is one scalar -> SMEM.
                pl.BlockSpec(memory_space=pltpu.MemorySpace.SMEM),
            ],
            # Output block is revisited across the K axis; written on last k.
            out_specs=pl.BlockSpec((tile_r, g), lambda i, k: (i, 0)),
            scratch_shapes=[pltpu.VMEM((tile_r, g), jnp.float32)],
        ),
        compiler_params=pltpu.CompilerParams(
            # Independent row tiles -> shard across both TensorCores on v7x;
            # K is a reduction -> "arbitrary".
            dimension_semantics=("parallel", "arbitrary"),
            # Safe on every generation (v7x scoped default is 32 of 64 MiB).
            vmem_limit_bytes=32 * 1024 * 1024,
        ),
        cost_estimate=pl.CostEstimate(
            flops=2 * n * f,
            transcendentals=0,
            bytes_accessed=n * f * itemsize + n * 4 + f_eff * g * itemsize,
        ),
    )(x_k, w_block, b)

    # .reshape(-1) from the PyTorch forward; drop padded tail rows.
    return out.reshape(-1)[:n]


if __name__ == "__main__":
    key = jax.random.PRNGKey(0)
    kw, kb, k1, k2, k3, k4 = jax.random.split(key, 6)

    # --- Case 1: tiny shapes consistent with the module (rows=8, features=32).
    N, F = 8, 32
    bound = 1.0 / jnp.sqrt(jnp.float32(F))
    weight = jax.random.uniform(kw, (1, F), jnp.float32, -bound, bound)
    bias = jax.random.uniform(kb, (1,), jnp.float32, -bound, bound)
    x1 = jax.random.normal(k1, (N, F), dtype=jnp.float32)
    y1 = jax.block_until_ready(model_ann_forward(x1, weight, bias))
    ref1 = (x1 @ weight.T + bias).reshape(-1)
    assert y1.shape == (N,)
    assert jnp.allclose(y1, ref1, atol=1e-4, rtol=1e-4)

    # --- Case 2: multi-row-tile path with a padded tail (forced small budget).
    N2 = 9000
    x2 = jax.random.normal(k2, (N2, F), dtype=jnp.float32)
    y2 = jax.block_until_ready(
        model_ann_forward(x2, weight, bias, target_tile_bytes=256 * 1024)
    )
    ref2 = (x2 @ weight.T + bias).reshape(-1)
    assert y2.shape == (N2,)
    assert jnp.allclose(y2, ref2, atol=1e-4, rtol=1e-4)

    # --- Case 3: feature-axis (K) tiling path (wider F, forced small budget).
    N3, F3 = 512, 256
    bound3 = 1.0 / jnp.sqrt(jnp.float32(F3))
    w3 = jax.random.uniform(kw, (1, F3), jnp.float32, -bound3, bound3)
    b3 = jax.random.uniform(kb, (1,), jnp.float32, -bound3, bound3)
    x3 = jax.random.normal(k3, (N3, F3), dtype=jnp.float32)
    y3 = jax.block_until_ready(
        model_ann_forward(x3, w3, b3, target_tile_bytes=128 * 1024)
    )
    ref3 = (x3 @ w3.T + b3).reshape(-1)
    assert y3.shape == (N3,)
    assert jnp.allclose(y3, ref3, atol=1e-4, rtol=1e-4)

    # --- Case 4: N not divisible by the lane-fold factor (fold is skipped).
    N4 = 7
    x4 = jax.random.normal(k4, (N4, F), dtype=jnp.float32)
    y4 = jax.block_until_ready(model_ann_forward(x4, weight, bias))
    ref4 = (x4 @ weight.T + bias).reshape(-1)
    assert y4.shape == (N4,)
    assert jnp.allclose(y4, ref4, atol=1e-4, rtol=1e-4)

    print("KERNEL_OK")
</pallas_src>

<mosaic_0001>
module attributes {stable_mosaic.version = 11 : i64} {
  func.func @_linear_kernel(%arg0: i32, %arg1: i32, %arg2: memref<2x128xf32, #tpu.memory_space<vmem>>, %arg3: memref<128x4xf32, #tpu.memory_space<vmem>>, %arg4: memref<1xf32, #tpu.memory_space<smem>>, %arg5: memref<2x4xf32, #tpu.memory_space<vmem>>, %arg6: memref<2x4xf32, #tpu.memory_space<vmem>>) attributes {dimension_semantics = [#tpu.dimension_semantics<parallel>, #tpu.dimension_semantics<arbitrary>], iteration_bounds = array<i64: 1, 1>, scalar_prefetch = 0 : i64, scratch_operands = 1 : i64, tpu.core_type = #tpu.core_type<tc>, window_params = [{transform_indices = @transform_0, window_bounds = array<i64: 2, 128>}, {transform_indices = @transform_1, window_bounds = array<i64: 128, 4>}, {transform_indices = @transform_2, window_bounds = array<i64: 1>}, {transform_indices = @transform_3, window_bounds = array<i64: 2, 4>}]} {
    %c0_i32 = arith.constant 0 : i32
    %0 = arith.cmpi eq, %arg1, %c0_i32 : i32
    %1 = arith.extui %0 : i1 to i32
    %c0_i32_0 = arith.constant 0 : i32
    %2 = arith.cmpi ne, %1, %c0_i32_0 : i32
    scf.if %2 {
      %cst_10 = arith.constant 0.000000e+00 : f32
      %12 = vector.broadcast %cst_10 : f32 to vector<2x4xf32>
      %c0_11 = arith.constant 0 : index
      %c0_12 = arith.constant 0 : index
      %13 = vector.load %arg6[%c0_11, %c0_12] : memref<2x4xf32, #tpu.memory_space<vmem>>, vector<2x4xf32>
      tpu.vector_store %arg6[%c0_11, %c0_12], %12 {strides = array<i32>} : memref<2x4xf32, #tpu.memory_space<vmem>>, vector<2x4xf32>,
    } else {
    }
    %c0 = arith.constant 0 : index
    %c0_1 = arith.constant 0 : index
    %3 = vector.load %arg6[%c0, %c0_1] : memref<2x4xf32, #tpu.memory_space<vmem>>, vector<2x4xf32>
    %c0_2 = arith.constant 0 : index
    %c0_3 = arith.constant 0 : index
    %4 = vector.load %arg2[%c0_2, %c0_3] : memref<2x128xf32, #tpu.memory_space<vmem>>, vector<2x128xf32>
    %c0_4 = arith.constant 0 : index
    %c0_5 = arith.constant 0 : index
    %5 = vector.load %arg3[%c0_4, %c0_5] : memref<128x4xf32, #tpu.memory_space<vmem>>, vector<128x4xf32>
    %cst = arith.constant dense<0.000000e+00> : vector<2x4xf32>
    %6 = tpu.matmul %4, %5, %cst {dimension_numbers = #tpu.dot_dimension_numbers<[1], [0], [0], [1], [0, 0, 1, 1], [], []>} : vector<2x128xf32>, vector<128x4xf32>, vector<2x4xf32> -> vector<2x4xf32>
    %7 = arith.addf %3, %6 : vector<2x4xf32>
    %c0_6 = arith.constant 0 : index
    %c0_7 = arith.constant 0 : index
    %8 = vector.load %arg6[%c0_6, %c0_7] : memref<2x4xf32, #tpu.memory_space<vmem>>, vector<2x4xf32>
    tpu.vector_store %arg6[%c0_6, %c0_7], %7 {strides = array<i32>} : memref<2x4xf32, #tpu.memory_space<vmem>>, vector<2x4xf32>,
    %c0_i32_8 = arith.constant 0 : i32
    %9 = arith.cmpi eq, %arg1, %c0_i32_8 : i32
    %10 = arith.extui %9 : i1 to i32
    %c0_i32_9 = arith.constant 0 : i32
    %11 = arith.cmpi ne, %10, %c0_i32_9 : i32
    scf.if %11 {
      %c0_10 = arith.constant 0 : index
      %c0_11 = arith.constant 0 : index
      %12 = vector.load %arg6[%c0_10, %c0_11] : memref<2x4xf32, #tpu.memory_space<vmem>>, vector<2x4xf32>
      %c0_12 = arith.constant 0 : index
      %13 = memref.load %arg4[%c0_12] : memref<1xf32, #tpu.memory_space<smem>>
      %14 = vector.broadcast %13 : f32 to vector<2x4xf32>
      %15 = arith.addf %12, %14 : vector<2x4xf32>
      %c0_13 = arith.constant 0 : index
      %c0_14 = arith.constant 0 : index
      %16 = vector.load %arg5[%c0_13, %c0_14] : memref<2x4xf32, #tpu.memory_space<vmem>>, vector<2x4xf32>
      tpu.vector_store %arg5[%c0_13, %c0_14], %15 {strides = array<i32>} : memref<2x4xf32, #tpu.memory_space<vmem>>, vector<2x4xf32>,
    } else {
    }
    return
  }
  func.func @transform_0(%arg0: i32, %arg1: i32) -> (i32, i32) {
    %c0_i32 = arith.constant 0 : i32
    return %arg0, %arg1 : i32, i32
  }
  func.func @transform_1(%arg0: i32, %arg1: i32) -> (i32, i32) {
    %c0_i32 = arith.constant 0 : i32
    %c0_i32_0 = arith.constant 0 : i32
    return %arg1, %c0_i32 : i32, i32
  }
  func.func @transform_2(%arg0: i32, %arg1: i32) -> i32 {
    %c0_i32 = arith.constant 0 : i32
    %c0_i32_0 = arith.constant 0 : i32
    return %c0_i32 : i32
  }
  func.func @transform_3(%arg0: i32, %arg1: i32) -> (i32, i32) {
    %c0_i32 = arith.constant 0 : i32
    %c0_i32_0 = arith.constant 0 : i32
    return %arg0, %c0_i32 : i32, i32
  }
}

</mosaic_0001>

<bundles_post_ra>
// kernel: tpu_custom_call.1
= control target key start
LH: loop header
LB: loop body
LE: loop exit
PB: predicated region body
PF: predicated region fallthrough
CT: control target
= control target key end

     0   :  { %vm20_vm0 = vcmask 25600   ;;  %v212_v1 = vmov 0.0   ;;  %vm213_vm1 = vmmov 0   ;;  %s295_s0 = inlined_call_operand.vmem [shape: f32[2,128], index: 0, kind: input, shape index: {}]   ;;  %s296_s1 = inlined_call_operand.vmem [shape: f32[128,4], index: 1, kind: input, shape index: {}]   ;;  %s297_s2 = inlined_call_operand.<no memory space> [shape: f32[1], index: 2, kind: input, shape index: {}]   ;;  %s298_s3 = inlined_call_operand.hbm [shape: f32[2,4], index: 3, kind: output, shape index: {}]  }
   0x1   :  { %v39_v0 = vld [vmem:[%s296_s1 + $0x78] sm:$0xff]  ;;  %152 = vmatprep.subr.mxu0 %v212_v1  ;;  %v38_v2 = vld [vmem:[%s296_s1 + $0x70] sm:$0xff]  ;;  %184 = vmatprep.mubr.msk.f32.mxu0 %vm213_vm1, %v212_v1  ;;  %21 = vst.msk [vmem:[#allocation2] sm:$0x3] %vm20_vm0, %v212_v1  ;;  %v37_v3 = vld [vmem:[%s296_s1 + $0x68] sm:$0xff] }
   0x2   :  { %153 = vmatpush3.msra.mxu0 %v39_v0  ;;  %v36_v4 = vld [vmem:[%s296_s1 + $0x60] sm:$0xff] }
   0x3   :  { %154 = vmatprep.subr.mxu0 %v212_v1 }
   0x4   :  { %155 = vmatpush3.msra.mxu0 %v38_v2 }
   0x5   :  { %156 = vmatprep.subr.mxu0 %v212_v1 }
   0x6   :  { %9 = vsyncpa [#allocation5], 0  ;;  %157 = vmatpush3.msra.mxu0 %v37_v3  ;;  %v35_v5 = vld [vmem:[%s296_s1 + $0x58] sm:$0xff]  ;;  %v34_v6 = vld [vmem:[%s296_s1 + $0x50] sm:$0xff]  ;;  %v118_v22 = vstv %s297_s2  ;;  %s214_s21 = smov [#allocation4]  }
   0x7   :  { %158 = vmatprep.subr.mxu0 %v212_v1  ;;  %v33_v7 = vld [vmem:[%s296_s1 + $0x48] sm:$0xff]  ;;  %v32_v8 = vld [vmem:[%s296_s1 + $0x40] sm:$0xff]  ;;  %v31_v9 = vld [vmem:[%s296_s1 + $0x38] sm:$0xff] }
   0x8   :  { %159 = vmatpush3.msra.mxu0 %v36_v4  ;;  %v30_v10 = vld [vmem:[%s296_s1 + $0x30] sm:$0xff]  ;;  %v29_v11 = vld [vmem:[%s296_s1 + $0x28] sm:$0xff]  ;;  %v28_v12 = vld [vmem:[%s296_s1 + $0x20] sm:$0xff] }
   0x9   :  { %160 = vmatprep.subr.mxu0 %v212_v1  ;;  %v27_v13 = vld [vmem:[%s296_s1 + $0x18] sm:$0xff]  ;;  %v26_v14 = vld [vmem:[%s296_s1 + $0x10] sm:$0xff]  ;;  %v25_v15 = vld [vmem:[%s296_s1 + $0x8] sm:$0xff] }
   0xa   :  { %161 = vmatpush3.msra.mxu0 %v35_v5  ;;  %v24_v16 = vld [vmem:[%s296_s1] sm:$0xff]  ;;  %s127_s1 = sshll.u32 %s214_s21, 4  ;;  %s128_s1 = int_to_ptr.vmem [resolvable:$true] %s127_s1 }
   0xb   :  { %162 = vmatprep.subr.mxu0 %v212_v1  ;;  %v23_v17 = vld [vmem:[%s295_s0] sm:$0x3]  ;;  %s190_s0 = scalar_lea.vmem %s128_s1, 32  ;;  %p195_p1 = scmp.lt.s32.totalorder %s128_s1, %s128_s1 }
   0xc   :  { %163 = vmatpush3.msra.mxu0 %v34_v6  ;;  %v22_v18 = vld [vmem:[#allocation2] sm:$0x3]  ;;  %p191_p0 = scmp.ne.s32.totalorder %s128_s1, %s190_s0  ;;  %p196_p2 = scmp.lt.s32.totalorder %s190_s0, %s190_s0 }
   0xd   :  { %164 = vmatprep.subr.mxu0 %v212_v1 }
   0xe   :  { %165 = vmatpush3.msra.mxu0 %v33_v7  ;;  %p197_p3 = por %p196_p2, %p195_p1 }
   0xf   :  { %166 = vmatprep.subr.mxu0 %v212_v1 }
  0x10   :  { %167 = vmatpush3.msra.mxu0 %v32_v8  ;;  %p198_p4 = pnand %p197_p3, %p191_p0 }
  0x11   :  { %168 = vmatprep.subr.mxu0 %v212_v1 }
  0x12   :  { %169 = vmatpush3.msra.mxu0 %v31_v9 }
  0x13   :  { %170 = vmatprep.subr.mxu0 %v212_v1 }
  0x14   :  { %171 = vmatpush3.msra.mxu0 %v30_v10 }
  0x15   :  { %172 = vmatprep.subr.mxu0 %v212_v1 }
  0x16   :  { %173 = vmatpush3.msra.mxu0 %v29_v11 }
  0x17   :  { %174 = vmatprep.subr.mxu0 %v212_v1 }
  0x18   :  { %175 = vmatpush3.msra.mxu0 %v28_v12 }
  0x19   :  { %176 = vmatprep.subr.mxu0 %v212_v1 }
  0x1a   :  { %177 = vmatpush3.msra.mxu0 %v27_v13 }
  0x1b   :  { %178 = vmatprep.subr.mxu0 %v212_v1 }
  0x1c   :  { %179 = vmatpush3.msra.mxu0 %v26_v14 }
  0x1d   :  { %180 = vmatprep.subr.mxu0 %v212_v1 }
  0x1e   :  { %181 = vmatpush3.msra.mxu0 %v25_v15 }
  0x1f   :  { %182 = vmatprep.subr.mxu0 %v212_v1 }
  0x20   :  { %183 = vmatpush3.msra.mxu0 %v24_v16 }
  0x21   :  { %185 = vmatmul.mubr.f32.vlgmr.msra.gmra.mxu0 %v23_v17 }
  0xe1   :  { %v106_v19 = vpop.f32.mrf.mxu0 }
  0xe2   :  { %v110_v20 = vadd.f32 %v106_v19, %v22_v18 }
  0xe3   :  { %v186_v21 = vpop.f32.mrf.mxu0 }
  0xe4   :  { %112 = vst.msk [vmem:[#allocation2] sm:$0x3] %vm20_vm0, %v110_v20 }
  0xeb   :  { %v116_v23 = vld [vmem:[#allocation2] sm:$0x3] }
  0xec   :  { %v119_v24 = vadd.f32 %v118_v22, %v116_v23 }
  0xee   :  { %120 = vst.msk [vmem:[#allocation4] sm:$0x3] %vm20_vm0, %v119_v24 }
  0xef   :  { %201 = shalt.err (!%p198_p4)
}
  0xf0   :  { %130 = dma.vmem_to_hbm [thread:$0]  %s128_s1, 32, %s298_s3, [#allocation5]  }
  0xf1   :  { %210 = dma.done.wait [#allocation5], 32  }
  0xf2   :  { %211 = vsyncadd [#allocation5], 4294967264 }
  0xf3   :  { %134 = vsyncpa [#allocation5], 1 }

</bundles_post_ra>
